<compile_context>
chip_gen: v6e
topology: v6e:2x2x1
jax: 0.10.0
libtpu: 0.0.40
codegen_flags: <defaults>
</compile_context>

<pallas_src>
import functools

import jax
import jax.numpy as jnp
from jax.experimental import pallas as pl
from jax.experimental.pallas import tpu as pltpu


def _round_up(n, m):
    return ((n + m - 1) // m) * m


def _mlp_kernel(x_ref, w1_ref, b1_ref, w2_ref, b2_ref, o_ref):
    # x_ref: (bt, S*F) lane-dense.  The mean over S (and its 1/S scale) is
    # already folded into the tiled first-layer weight, so one matmul computes
    # linear1(x.mean(dim=1)).
    h = jnp.dot(x_ref[...], w1_ref[...], preferred_element_type=jnp.float32)
    h = jnp.maximum(h + b1_ref[...], 0.0)                          # (bt, H), ReLU

    # dropout: identity in eval/inference mode.
    # TODO(synk): training-mode dropout (p=0.5) via pltpu.prng_seed + pltpu.stateful_bernoulli.

    # linear2 against the lane-padded (H, 128) weight.  Padded columns carry
    # zero weight and a -1e30 bias, so they vanish in the softmax.
    logits = jnp.dot(h, w2_ref[...], preferred_element_type=jnp.float32)
    logits = logits + b2_ref[...]                                  # (bt, 128)

    # Numerically stable softmax over the last (lane) dim.
    m = jnp.max(logits, axis=-1, keepdims=True)
    e = jnp.exp(logits - m)
    denom = jnp.sum(e, axis=-1, keepdims=True)
    inv = pl.reciprocal(denom, approx=True)                        # EUP slot
    o_ref[...] = (e * inv).astype(o_ref.dtype)


@functools.partial(jax.jit, static_argnames=("block_b",))
def simple_mlp_forward(x, w1, b1, w2, b2, *, block_b=1024):
    assert block_b % 8 == 0, "block_b must be a sublane multiple"
    B, S, F = x.shape
    K = S * F
    H = w1.shape[1]
    O = w2.shape[1]
    LANES = 128
    O_pad = _round_up(max(O, LANES), LANES)

    # Fold mean(dim=1) into the K axis:
    #   x.mean(1) @ w1 == x.reshape(B, S*F) @ tile(w1 / S, (S, 1))
    x2 = x.reshape(B, K)                                              # free, keeps caller dtype
    w1t = jnp.tile(w1.astype(jnp.float32) / jnp.float32(S), (S, 1))   # (S*F, H)
    b1r = b1.reshape(1, H).astype(jnp.float32)

    # Lane-pad the second layer: zero weight columns, -1e30 bias (safe in f32)
    # so padded logits contribute exp() == 0 to the softmax denominator.
    w2p = jnp.zeros((H, O_pad), jnp.float32).at[:, :O].set(w2.astype(jnp.float32))
    b2p = jnp.full((1, O_pad), -1e30, dtype=jnp.float32).at[:, :O].set(
        b2.reshape(1, O).astype(jnp.float32))

    # Batch tile: multiple of 8 (or equal to B).  No input padding — Pallas
    # masks the trailing partial block and batch rows are independent.
    if B > block_b:
        bt = block_b
    elif B >= 16:
        # Keep >= 2 grid steps so the "parallel" batch axis can actually split
        # across v7x's two TensorCores.
        bt = _round_up(pl.cdiv(B, 2), 8)
    else:
        bt = B
    grid = (pl.cdiv(B, bt),)

    x_bytes = x.dtype.itemsize
    cost = pl.CostEstimate(
        flops=2 * B * (K * H + H * O_pad),
        transcendentals=B * O_pad,
        bytes_accessed=(B * K * x_bytes
                        + (K * H + H + H * O_pad + O_pad) * 4
                        + B * O_pad * 4),
    )

    out_padded = pl.pallas_call(
        _mlp_kernel,
        out_shape=jax.ShapeDtypeStruct((B, O_pad), jnp.float32),
        grid=grid,
        in_specs=[
            # Activations stream through the double-buffered pipeline.
            pl.BlockSpec((bt, K), lambda i: (i, 0)),
            # Grid-invariant weights/biases: VMEM-resident, single-buffered.
            pl.BlockSpec((K, H), lambda i: (0, 0),
                         pipeline_mode=pl.Buffered(1)),
            pl.BlockSpec((1, H), lambda i: (0, 0),
                         pipeline_mode=pl.Buffered(1)),
            pl.BlockSpec((H, O_pad), lambda i: (0, 0),
                         pipeline_mode=pl.Buffered(1)),
            pl.BlockSpec((1, O_pad), lambda i: (0, 0),
                         pipeline_mode=pl.Buffered(1)),
        ],
        out_specs=pl.BlockSpec((bt, O_pad), lambda i: (i, 0)),
        compiler_params=pltpu.CompilerParams(
            dimension_semantics=("parallel",)),
        cost_estimate=cost,
    )(x2, w1t, b1r, w2p, b2p)

    # Drop the lane padding inside the same jit so XLA can fuse the slice with
    # the consumer; return out_padded unsliced if the caller accepts (B, 128).
    return out_padded[:, :O]


def init_params(key, in_features, hidden_size=256, out_features=2):
    # Deterministic PyTorch-style uniform init: U(-1/sqrt(fan_in), 1/sqrt(fan_in))
    k1, k2, k3, k4 = jax.random.split(key, 4)
    lim1 = 1.0 / jnp.sqrt(jnp.float32(in_features))
    lim2 = 1.0 / jnp.sqrt(jnp.float32(hidden_size))
    w1 = jax.random.uniform(k1, (in_features, hidden_size), jnp.float32, -lim1, lim1)
    b1 = jax.random.uniform(k2, (1, hidden_size), jnp.float32, -lim1, lim1)
    w2 = jax.random.uniform(k3, (hidden_size, out_features), jnp.float32, -lim2, lim2)
    b2 = jax.random.uniform(k4, (1, out_features), jnp.float32, -lim2, lim2)
    return w1, b1, w2, b2


if __name__ == "__main__":
    key = jax.random.PRNGKey(0)
    kx, kp = jax.random.split(key)

    B, S, F = 2, 8, 32      # batch, seq (reduced by mean), in_features
    H, O = 256, 2           # hidden_size, out_features

    x = jax.random.normal(kx, (B, S, F), dtype=jnp.float32)
    w1, b1, w2, b2 = init_params(kp, F, H, O)

    out = simple_mlp_forward(x, w1, b1, w2, b2)
    out = jax.block_until_ready(out)

    # Plain-JAX reference (eval-mode dropout == identity).
    xm = x.mean(axis=1)
    h = jnp.maximum(xm @ w1 + b1, 0.0)
    ref = jax.nn.softmax(h @ w2 + b2, axis=-1)

    assert out.shape == (B, O)
    # approx=True reciprocal (EUP) trades ~1e-3 of normalization for a free divide slot.
    assert jnp.allclose(out, ref, atol=2e-3, rtol=0.0)
    assert jnp.allclose(out.sum(axis=-1), 1.0, atol=2e-3)

    print("KERNEL_OK")
</pallas_src>

<mosaic_0001>
module attributes {stable_mosaic.version = 11 : i64} {
  func.func @_mlp_kernel(%arg0: i32, %arg1: memref<2x256xf32, #tpu.memory_space<vmem>>, %arg2: memref<256x256xf32, #tpu.memory_space<vmem>>, %arg3: memref<1x256xf32, #tpu.memory_space<vmem>>, %arg4: memref<256x128xf32, #tpu.memory_space<vmem>>, %arg5: memref<1x128xf32, #tpu.memory_space<vmem>>, %arg6: memref<2x128xf32, #tpu.memory_space<vmem>>) attributes {dimension_semantics = [#tpu.dimension_semantics<parallel>], iteration_bounds = array<i64: 1>, scalar_prefetch = 0 : i64, scratch_operands = 0 : i64, tpu.core_type = #tpu.core_type<tc>, window_params = [{transform_indices = @transform_0, window_bounds = array<i64: 2, 256>}, {pipeline_mode = #tpu.pipeline_mode<synchronous>, transform_indices = @transform_1, window_bounds = array<i64: 256, 256>}, {pipeline_mode = #tpu.pipeline_mode<synchronous>, transform_indices = @transform_2, window_bounds = array<i64: 1, 256>}, {pipeline_mode = #tpu.pipeline_mode<synchronous>, transform_indices = @transform_3, window_bounds = array<i64: 256, 128>}, {pipeline_mode = #tpu.pipeline_mode<synchronous>, transform_indices = @transform_4, window_bounds = array<i64: 1, 128>}, {transform_indices = @transform_5, window_bounds = array<i64: 2, 128>}]} {
    %c0 = arith.constant 0 : index
    %c0_0 = arith.constant 0 : index
    %0 = vector.load %arg1[%c0, %c0_0] : memref<2x256xf32, #tpu.memory_space<vmem>>, vector<2x256xf32>
    %c0_1 = arith.constant 0 : index
    %c0_2 = arith.constant 0 : index
    %1 = vector.load %arg2[%c0_1, %c0_2] : memref<256x256xf32, #tpu.memory_space<vmem>>, vector<256x256xf32>
    %cst = arith.constant dense<0.000000e+00> : vector<2x256xf32>
    %2 = tpu.matmul %0, %1, %cst {dimension_numbers = #tpu.dot_dimension_numbers<[1], [0], [0], [1], [0, 0, 1, 1], [], []>} : vector<2x256xf32>, vector<256x256xf32>, vector<2x256xf32> -> vector<2x256xf32>
    %c0_3 = arith.constant 0 : index
    %c0_4 = arith.constant 0 : index
    %3 = vector.load %arg3[%c0_3, %c0_4] : memref<1x256xf32, #tpu.memory_space<vmem>>, vector<1x256xf32>
    %4 = vector.broadcast %3 : vector<1x256xf32> to vector<2x256xf32>
    %5 = arith.addf %2, %4 : vector<2x256xf32>
    %cst_5 = arith.constant 0.000000e+00 : f32
    %6 = vector.broadcast %cst_5 : f32 to vector<2x256xf32>
    %7 = arith.maximumf %5, %6 : vector<2x256xf32>
    %c0_6 = arith.constant 0 : index
    %c0_7 = arith.constant 0 : index
    %8 = vector.load %arg4[%c0_6, %c0_7] : memref<256x128xf32, #tpu.memory_space<vmem>>, vector<256x128xf32>
    %cst_8 = arith.constant dense<0.000000e+00> : vector<2x128xf32>
    %9 = tpu.matmul %7, %8, %cst_8 {dimension_numbers = #tpu.dot_dimension_numbers<[1], [0], [0], [1], [0, 0, 1, 1], [], []>} : vector<2x256xf32>, vector<256x128xf32>, vector<2x128xf32> -> vector<2x128xf32>
    %c0_9 = arith.constant 0 : index
    %c0_10 = arith.constant 0 : index
    %10 = vector.load %arg5[%c0_9, %c0_10] : memref<1x128xf32, #tpu.memory_space<vmem>>, vector<1x128xf32>
    %11 = vector.broadcast %10 : vector<1x128xf32> to vector<2x128xf32>
    %12 = arith.addf %9, %11 : vector<2x128xf32>
    %cst_11 = arith.constant dense<0xFF800000> : vector<2xf32>
    %13 = vector.multi_reduction <maximumf>, %12, %cst_11 [1] : vector<2x128xf32> to vector<2xf32>
    %14 = vector.shape_cast %13 : vector<2xf32> to vector<2x1xf32>
    %15 = vector.broadcast %14 : vector<2x1xf32> to vector<2x128xf32>
    %16 = arith.subf %12, %15 : vector<2x128xf32>
    %17 = math.exp %16 : vector<2x128xf32>
    %cst_12 = arith.constant dense<0.000000e+00> : vector<2xf32>
    %18 = vector.multi_reduction <add>, %17, %cst_12 [1] : vector<2x128xf32> to vector<2xf32>
    %19 = vector.shape_cast %18 : vector<2xf32> to vector<2x1xf32>
    %20 = tpu.reciprocal %19 {approx = true} : vector<2x1xf32> -> vector<2x1xf32>
    %21 = vector.broadcast %20 : vector<2x1xf32> to vector<2x128xf32>
    %22 = arith.mulf %17, %21 : vector<2x128xf32>
    %c0_13 = arith.constant 0 : index
    %c0_14 = arith.constant 0 : index
    %23 = vector.load %arg6[%c0_13, %c0_14] : memref<2x128xf32, #tpu.memory_space<vmem>>, vector<2x128xf32>
    tpu.vector_store %arg6[%c0_13, %c0_14], %22 {strides = array<i32>} : memref<2x128xf32, #tpu.memory_space<vmem>>, vector<2x128xf32>,
    return
  }
  func.func @transform_0(%arg0: i32) -> (i32, i32) {
    %c0_i32 = arith.constant 0 : i32
    %c0_i32_0 = arith.constant 0 : i32
    return %arg0, %c0_i32 : i32, i32
  }
  func.func @transform_1(%arg0: i32) -> (i32, i32) {
    %c0_i32 = arith.constant 0 : i32
    %c0_i32_0 = arith.constant 0 : i32
    %c0_i32_1 = arith.constant 0 : i32
    return %c0_i32, %c0_i32_0 : i32, i32
  }
  func.func @transform_2(%arg0: i32) -> (i32, i32) {
    %c0_i32 = arith.constant 0 : i32
    %c0_i32_0 = arith.constant 0 : i32
    %c0_i32_1 = arith.constant 0 : i32
    return %c0_i32, %c0_i32_0 : i32, i32
  }
  func.func @transform_3(%arg0: i32) -> (i32, i32) {
    %c0_i32 = arith.constant 0 : i32
    %c0_i32_0 = arith.constant 0 : i32
    %c0_i32_1 = arith.constant 0 : i32
    return %c0_i32, %c0_i32_0 : i32, i32
  }
  func.func @transform_4(%arg0: i32) -> (i32, i32) {
    %c0_i32 = arith.constant 0 : i32
    %c0_i32_0 = arith.constant 0 : i32
    %c0_i32_1 = arith.constant 0 : i32
    return %c0_i32, %c0_i32_0 : i32, i32
  }
  func.func @transform_5(%arg0: i32) -> (i32, i32) {
    %c0_i32 = arith.constant 0 : i32
    %c0_i32_0 = arith.constant 0 : i32
    return %arg0, %c0_i32 : i32, i32
  }
}

</mosaic_0001>

<bundles_post_ra>
// kernel: simple_mlp_forward.1
= control target key start
LH: loop header
LB: loop body
LE: loop exit
PB: predicated region body
PF: predicated region fallthrough
CT: control target
= control target key end

     0   :  { %s718_s0 = inlined_call_operand.vmem [shape: f32[2,256], index: 0, kind: input, shape index: {}]   ;;  %s719_s1 = inlined_call_operand.vmem [shape: f32[256,256], index: 1, kind: input, shape index: {}]   ;;  %s720_s2 = inlined_call_operand.vmem [shape: f32[1,256], index: 2, kind: input, shape index: {}]   ;;  %s721_s3 = inlined_call_operand.vmem [shape: f32[256,128], index: 3, kind: input, shape index: {}]   ;;  %s722_s4 = inlined_call_operand.vmem [shape: f32[1,128], index: 4, kind: input, shape index: {}]   ;;  %s723_s5 = inlined_call_operand.hbm [shape: f32[2,128], index: 5, kind: output, shape index: {}]  }
   0x1   :  { %v53_v0 = vld [vmem:[%s719_s1 + $0xf8] sm:$0xff]  ;;  %v52_v1 = vld [vmem:[%s719_s1 + $0xf0] sm:$0xff]  ;;  %v51_v2 = vld [vmem:[%s719_s1 + $0xe8] sm:$0xff] }
   0x2   :  { %109 = vmatprep.subr.mxu0 %v53_v0  ;;  %v50_v3 = vld [vmem:[%s719_s1 + $0xe0] sm:$0xff]  ;;  %v49_v4 = vld [vmem:[%s719_s1 + $0xd8] sm:$0xff]  ;;  %v48_v5 = vld [vmem:[%s719_s1 + $0xd0] sm:$0xff] }
   0x3   :  { %110 = vmatpush1.msra.mxu0 %v52_v1  ;;  %v47_v6 = vld [vmem:[%s719_s1 + $0xc8] sm:$0xff]  ;;  %v46_v7 = vld [vmem:[%s719_s1 + $0xc0] sm:$0xff]  ;;  %v45_v8 = vld [vmem:[%s719_s1 + $0xb8] sm:$0xff] }
   0x4   :  { %111 = vmatprep.subr.mxu0 %v51_v2  ;;  %v44_v9 = vld [vmem:[%s719_s1 + $0xb0] sm:$0xff]  ;;  %v43_v10 = vld [vmem:[%s719_s1 + $0xa8] sm:$0xff]  ;;  %v42_v11 = vld [vmem:[%s719_s1 + $0xa0] sm:$0xff] }
   0x5   :  { %112 = vmatpush1.msra.mxu0 %v50_v3  ;;  %v41_v12 = vld [vmem:[%s719_s1 + $0x98] sm:$0xff]  ;;  %v40_v13 = vld [vmem:[%s719_s1 + $0x90] sm:$0xff]  ;;  %v39_v14 = vld [vmem:[%s719_s1 + $0x88] sm:$0xff] }
   0x6   :  { %113 = vmatprep.subr.mxu0 %v49_v4  ;;  %v38_v15 = vld [vmem:[%s719_s1 + $0x80] sm:$0xff]  ;;  %v37_v16 = vld [vmem:[%s719_s1 + $0x78] sm:$0xff]  ;;  %v36_v17 = vld [vmem:[%s719_s1 + $0x70] sm:$0xff] }
   0x7   :  { %114 = vmatpush1.msra.mxu0 %v48_v5  ;;  %v35_v18 = vld [vmem:[%s719_s1 + $0x68] sm:$0xff]  ;;  %v34_v19 = vld [vmem:[%s719_s1 + $0x60] sm:$0xff]  ;;  %v33_v20 = vld [vmem:[%s719_s1 + $0x58] sm:$0xff] }
   0x8   :  { %115 = vmatprep.subr.mxu0 %v47_v6  ;;  %v32_v21 = vld [vmem:[%s719_s1 + $0x50] sm:$0xff]  ;;  %v31_v22 = vld [vmem:[%s719_s1 + $0x48] sm:$0xff]  ;;  %v30_v23 = vld [vmem:[%s719_s1 + $0x40] sm:$0xff] }
   0x9   :  { %116 = vmatpush1.msra.mxu0 %v46_v7  ;;  %v488_v24 = vld.sshfl [vmem:[%s718_s0] sm:$0x33 pattern:$0x76325410]  ;;  %v213_v25 = vld [vmem:[%s721_s3 + $0xf8] sm:$0xff]  ;;  %v212_v29 = vld [vmem:[%s721_s3 + $0xf0] sm:$0xff] }
   0xa   :  { %117 = vmatprep.subr.mxu0 %v45_v8  ;;  %v29_v26 = vld [vmem:[%s719_s1 + $0x38] sm:$0xff]  ;;  %v106_v27 = vcombine.high %v488_v24, %v488_v24  ;;  %320 = vmatprep.subr.mxu1 %v213_v25  ;;  %v28_v30 = vld [vmem:[%s719_s1 + $0x30] sm:$0xff]  ;;  %v27_v32 = vld [vmem:[%s719_s1 + $0x28] sm:$0xff] }
   0xb   :  { %118 = vmatpush1.msra.mxu0 %v44_v9  ;;  %v197_v28 = vld [vmem:[%s721_s3 + $0x78] sm:$0xff]  ;;  %v196_v31 = vld [vmem:[%s721_s3 + $0x70] sm:$0xff]  ;;  %v211_v33 = vld [vmem:[%s721_s3 + $0xe8] sm:$0xff] }
   0xc   :  { %119 = vmatprep.subr.mxu0 %v43_v10  ;;  %321 = vmatpush3.msra.mxu1 %v197_v28  ;;  %v26_v34 = vld [vmem:[%s719_s1 + $0x20] sm:$0xff]  ;;  %v195_v35 = vld [vmem:[%s721_s3 + $0x68] sm:$0xff]  ;;  %v25_v36 = vld [vmem:[%s719_s1 + $0x18] sm:$0xff] }
   0xd   :  { %120 = vmatpush1.msra.mxu0 %v42_v11  ;;  %173 = vmatprep.mubr.f32.mxu0 %v106_v27  ;;  %v210_v37 = vld [vmem:[%s721_s3 + $0xe0] sm:$0xff]  ;;  %v24_v38 = vld [vmem:[%s719_s1 + $0x10] sm:$0xff]  ;;  %v23_v40 = vld [vmem:[%s719_s1 + $0x8] sm:$0xff] }
   0xe   :  { %121 = vmatprep.subr.mxu0 %v41_v12  ;;  %322 = vmatprep.subr.mxu1 %v212_v29  ;;  %v194_v39 = vld [vmem:[%s721_s3 + $0x60] sm:$0xff]  ;;  %v209_v41 = vld [vmem:[%s721_s3 + $0xd8] sm:$0xff]  ;;  %v208_v45 = vld [vmem:[%s721_s3 + $0xd0] sm:$0xff] }
   0xf   :  { %122 = vmatpush1.msra.mxu0 %v40_v13  ;;  %323 = vmatpush3.msra.mxu1 %v196_v31  ;;  %v22_v42 = vld [vmem:[%s719_s1] sm:$0xff]  ;;  %v193_v43 = vld [vmem:[%s721_s3 + $0x58] sm:$0xff] }
  0x10   :  { %123 = vmatprep.subr.mxu0 %v39_v14  ;;  %324 = vmatprep.subr.mxu1 %v211_v33  ;;  %v85_v44 = vld [vmem:[%s719_s1 + $0x1f8] sm:$0xff] }
  0x11   :  { %124 = vmatpush1.msra.mxu0 %v38_v15  ;;  %325 = vmatpush3.msra.mxu1 %v195_v35 }
  0x12   :  { %125 = vmatprep.subr.mxu0 %v37_v16  ;;  %326 = vmatprep.subr.mxu1 %v210_v37 }
  0x13   :  { %126 = vmatpush1.msra.mxu0 %v36_v17  ;;  %327 = vmatpush3.msra.mxu1 %v194_v39 }
  0x14   :  { %127 = vmatprep.subr.mxu0 %v35_v18 }
  0x15   :  { %128 = vmatpush1.msra.mxu0 %v34_v19 }
  0x16   :  { %129 = vmatprep.subr.mxu0 %v33_v20 }
  0x17   :  { %130 = vmatpush1.msra.mxu0 %v32_v21 }
  0x18   :  { %131 = vmatprep.subr.mxu0 %v31_v22 }
  0x19   :  { %132 = vmatpush1.msra.mxu0 %v30_v23 }
  0x1a   :  { %133 = vmatprep.subr.mxu0 %v29_v26 }
  0x1b   :  { %134 = vmatpush1.msra.mxu0 %v28_v30 }
  0x1c   :  { %135 = vmatprep.subr.mxu0 %v27_v32 }
  0x1d   :  { %136 = vmatpush1.msra.mxu0 %v26_v34 }
  0x1e   :  { %137 = vmatprep.subr.mxu0 %v25_v36 }
  0x1f   :  { %138 = vmatpush1.msra.mxu0 %v24_v38 }
  0x20   :  { %10 = vsyncpa [#allocation3], 0  ;;  %139 = vmatprep.subr.mxu0 %v23_v40  ;;  %v84_v46 = vld [vmem:[%s719_s1 + $0x1f0] sm:$0xff]  ;;  %328 = vmatprep.subr.mxu1 %v209_v41  ;;  %v83_v48 = vld [vmem:[%s719_s1 + $0x1e8] sm:$0xff]  ;;  %v88_v34 = vlaneseq  ;;  %vm291_vm0 = vcmask 1041408  }
  0x21   :  { %v192_v47 = vld [vmem:[%s721_s3 + $0x50] sm:$0xff]  ;;  %140 = vmatpush1.msra.mxu0 %v22_v42  ;;  %329 = vmatpush3.msra.mxu1 %v193_v43  ;;  %v207_v49 = vld [vmem:[%s721_s3 + $0xc8] sm:$0xff]  ;;  %v82_v50 = vld [vmem:[%s719_s1 + $0x1e0] sm:$0xff] }
  0x22   :  { %141 = vmatprep.subr.mxu0 %v85_v44  ;;  %330 = vmatprep.subr.mxu1 %v208_v45  ;;  %v191_v51 = vld [vmem:[%s721_s3 + $0x48] sm:$0xff]  ;;  %v81_v52 = vld [vmem:[%s719_s1 + $0x1d8] sm:$0xff]  ;;  %v206_v53 = vld [vmem:[%s721_s3 + $0xc0] sm:$0xff]  ;;  %v89_v35 = vshrl.u32 %v88_v34, 7 }
  0x23   :  { %142 = vmatpush2.msra.mxu0 %v84_v46  ;;  %331 = vmatpush3.msra.mxu1 %v192_v47  ;;  %v80_v54 = vld [vmem:[%s719_s1 + $0x1d0] sm:$0xff]  ;;  %v190_v55 = vld [vmem:[%s721_s3 + $0x40] sm:$0xff]  ;;  %v79_v56 = vld [vmem:[%s719_s1 + $0x1c8] sm:$0xff] }
  0x24   :  { %143 = vmatprep.subr.mxu0 %v83_v48  ;;  %332 = vmatprep.subr.mxu1 %v207_v49  ;;  %v205_v57 = vld [vmem:[%s721_s3 + $0xb8] sm:$0xff]  ;;  %v78_v58 = vld [vmem:[%s719_s1 + $0x1c0] sm:$0xff]  ;;  %v204_v61 = vld [vmem:[%s721_s3 + $0xb0] sm:$0xff]  ;;  %v90_v36 = vsub.s32 0, %v89_v35  ;;  %v94_v38 = vsub.s32 1, %v89_v35 }
  0x25   :  { %144 = vmatpush2.msra.mxu0 %v82_v50  ;;  %333 = vmatpush3.msra.mxu1 %v191_v51  ;;  %v189_v59 = vld [vmem:[%s721_s3 + $0x38] sm:$0xff]  ;;  %v76_v62 = vld [vmem:[%s719_s1 + $0x1b0] sm:$0xff]  ;;  %v75_v0 = vld [vmem:[%s719_s1 + $0x1a8] sm:$0xff] }
  0x26   :  { %145 = vmatprep.subr.mxu0 %v81_v52  ;;  %334 = vmatprep.subr.mxu1 %v206_v53  ;;  %v77_v60 = vld [vmem:[%s719_s1 + $0x1b8] sm:$0xff]  ;;  %v188_v63 = vld [vmem:[%s721_s3 + $0x30] sm:$0xff]  ;;  %v203_v1 = vld [vmem:[%s721_s3 + $0xa8] sm:$0xff] }
  0x27   :  { %146 = vmatpush2.msra.mxu0 %v80_v54  ;;  %335 = vmatpush3.msra.mxu1 %v190_v55  ;;  %v74_v2 = vld [vmem:[%s719_s1 + $0x1a0] sm:$0xff]  ;;  %v187_v3 = vld [vmem:[%s721_s3 + $0x28] sm:$0xff]  ;;  %v73_v4 = vld [vmem:[%s719_s1 + $0x198] sm:$0xff] }
  0x28   :  { %147 = vmatprep.subr.mxu0 %v79_v56  ;;  %336 = vmatprep.subr.mxu1 %v205_v57  ;;  %v202_v5 = vld [vmem:[%s721_s3 + $0xa0] sm:$0xff]  ;;  %v72_v6 = vld [vmem:[%s719_s1 + $0x190] sm:$0xff]  ;;  %v71_v8 = vld [vmem:[%s719_s1 + $0x188] sm:$0xff] }
  0x29   :  { %148 = vmatpush2.msra.mxu0 %v78_v58  ;;  %337 = vmatpush3.msra.mxu1 %v189_v59  ;;  %v186_v7 = vld [vmem:[%s721_s3 + $0x20] sm:$0xff]  ;;  %v69_v10 = vld [vmem:[%s719_s1 + $0x178] sm:$0xff]  ;;  %v68_v11 = vld [vmem:[%s719_s1 + $0x170] sm:$0xff] }
  0x2a   :  { %149 = vmatprep.subr.mxu0 %v77_v60  ;;  %338 = vmatprep.subr.mxu1 %v204_v61  ;;  %v70_v9 = vld [vmem:[%s719_s1 + $0x180] sm:$0xff]  ;;  %v67_v12 = vld [vmem:[%s719_s1 + $0x168] sm:$0xff]  ;;  %v65_v14 = vld [vmem:[%s719_s1 + $0x158] sm:$0xff] }
  0x2b   :  { %150 = vmatpush2.msra.mxu0 %v76_v62  ;;  %339 = vmatpush3.msra.mxu1 %v188_v63  ;;  %v66_v13 = vld [vmem:[%s719_s1 + $0x160] sm:$0xff]  ;;  %v64_v15 = vld [vmem:[%s719_s1 + $0x150] sm:$0xff]  ;;  %v63_v16 = vld [vmem:[%s719_s1 + $0x148] sm:$0xff] }
  0x2c   :  { %151 = vmatprep.subr.mxu0 %v75_v0  ;;  %340 = vmatprep.subr.mxu1 %v203_v1  ;;  %v62_v17 = vld [vmem:[%s719_s1 + $0x140] sm:$0xff]  ;;  %v61_v18 = vld [vmem:[%s719_s1 + $0x138] sm:$0xff]  ;;  %v60_v19 = vld [vmem:[%s719_s1 + $0x130] sm:$0xff] }
  0x2d   :  { %152 = vmatpush2.msra.mxu0 %v74_v2  ;;  %341 = vmatpush3.msra.mxu1 %v187_v3  ;;  %v59_v20 = vld [vmem:[%s719_s1 + $0x128] sm:$0xff]  ;;  %v58_v21 = vld [vmem:[%s719_s1 + $0x120] sm:$0xff]  ;;  %v57_v22 = vld [vmem:[%s719_s1 + $0x118] sm:$0xff] }
  0x2e   :  { %153 = vmatprep.subr.mxu0 %v73_v4  ;;  %342 = vmatprep.subr.mxu1 %v202_v5  ;;  %v56_v23 = vld [vmem:[%s719_s1 + $0x110] sm:$0xff]  ;;  %v55_v25 = vld [vmem:[%s719_s1 + $0x108] sm:$0xff]  ;;  %v54_v26 = vld [vmem:[%s719_s1 + $0x100] sm:$0xff] }
  0x2f   :  { %154 = vmatpush2.msra.mxu0 %v72_v6  ;;  %343 = vmatpush3.msra.mxu1 %v186_v7  ;;  %v201_v27 = vld [vmem:[%s721_s3 + $0x98] sm:$0xff]  ;;  %v200_v29 = vld [vmem:[%s721_s3 + $0x90] sm:$0xff]  ;;  %v183_v31 = vld [vmem:[%s721_s3 + $0x8] sm:$0xff] }
  0x30   :  { %155 = vmatprep.subr.mxu0 %v71_v8  ;;  %344 = vmatprep.subr.mxu1 %v201_v27  ;;  %v185_v28 = vld [vmem:[%s721_s3 + $0x18] sm:$0xff]  ;;  %v184_v30 = vld [vmem:[%s721_s3 + $0x10] sm:$0xff]  ;;  %v198_v32 = vld [vmem:[%s721_s3 + $0x80] sm:$0xff] }
  0x31   :  { %156 = vmatpush2.msra.mxu0 %v70_v9  ;;  %345 = vmatpush3.msra.mxu1 %v185_v28  ;;  %v182_v33 = vld [vmem:[%s721_s3] sm:$0xff] }
  0x32   :  { %157 = vmatprep.subr.mxu0 %v69_v10  ;;  %346 = vmatprep.subr.mxu1 %v200_v29  ;;  %v86_v37 = vld [vmem:[%s720_s2] sm:$0x3]  ;;  %s382_s2 = smov [#allocation2]  }
  0x33   :  { %158 = vmatpush2.msra.mxu0 %v68_v11  ;;  %347 = vmatpush3.msra.mxu1 %v184_v30  ;;  %v91_v39 = vrot.slane %v86_v37, %v90_v36  ;;  %v95_v40 = vrot.slane %v86_v37, %v94_v38  ;;  %v319_v49 = vld [vmem:[%s722_s4] ss:$0 sm:$0xff]  ;;  %s310_s8 = sshll.u32 %s382_s2, 4  ;;  %s311_s8 = int_to_ptr.vmem [resolvable:$true] %s310_s8 }
  0x34   :  { %159 = vmatprep.subr.mxu0 %v67_v12  ;;  %s360_s4 = scalar_lea.vmem %s311_s8, 32  ;;  %p365_p1 = scmp.lt.s32.totalorder %s311_s8, %s311_s8 }
  0x35   :  { %160 = vmatpush2.msra.mxu0 %v66_v13  ;;  %p361_p0 = scmp.ne.s32.totalorder %s311_s8, %s360_s4  ;;  %p366_p2 = scmp.lt.s32.totalorder %s360_s4, %s360_s4 }
  0x36   :  { %161 = vmatprep.subr.mxu0 %v65_v14 }
  0x37   :  { %162 = vmatpush2.msra.mxu0 %v64_v15  ;;  %p367_p3 = por %p366_p2, %p365_p1 }
  0x38   :  { %163 = vmatprep.subr.mxu0 %v63_v16 }
  0x39   :  { %164 = vmatpush2.msra.mxu0 %v62_v17  ;;  %p368_p4 = pnand %p367_p3, %p361_p0 }
  0x3a   :  { %165 = vmatprep.subr.mxu0 %v61_v18 }
  0x3b   :  { %166 = vmatpush2.msra.mxu0 %v60_v19 }
  0x3c   :  { %167 = vmatprep.subr.mxu0 %v59_v20 }
  0x3d   :  { %168 = vmatpush2.msra.mxu0 %v58_v21 }
  0x3e   :  { %169 = vmatprep.subr.mxu0 %v57_v22 }
  0x3f   :  { %170 = vmatpush2.msra.mxu0 %v56_v23 }
  0x40   :  { %171 = vmatprep.subr.mxu0 %v55_v25 }
  0x41   :  { %172 = vmatpush2.msra.mxu0 %v54_v26 }
  0x42   :  { %174 = vmatmul.mubr.f32.vlgmr.msra.gmra.mxu0 %v488_v24  ;;  %v199_v24 = vld [vmem:[%s721_s3 + $0x88] sm:$0xff] }
  0x43   :  { %348 = vmatprep.subr.mxu1 %v199_v24 }
  0x44   :  { %349 = vmatpush3.msra.mxu1 %v183_v31 }
  0x45   :  { %350 = vmatprep.subr.mxu1 %v198_v32 }
  0x46   :  { %351 = vmatpush3.msra.mxu1 %v182_v33 }
 0x102   :  { %v175_v41 = vpop.f32.mrf.mxu0 }
 0x103   :  { %v176_v42 = vadd.f32 %v175_v41, %v91_v39 }
 0x104   :  { %v177_v43 = vpop.f32.mrf.mxu0 }
 0x105   :  { %v178_v44 = vadd.f32 %v177_v43, %v95_v40  ;;  %v180_v46 = vmax.f32 %v176_v42, 0.0 }
 0x107   :  { %v181_v45 = vmax.f32 %v178_v44, 0.0 }
 0x109   :  { %285 = vmatprep.mubr.f32.mxu1 %v181_v45 }
 0x10a   :  { %286 = vmatmul.mubr.f32.vlgmr.msra.gmra.mxu1 %v180_v46 }
 0x1ca   :  { %v352_v47 = vpop.f32.mrf.mxu1 }
 0x1cc   :  { %v353_v48 = vpop.f32.mrf.mxu1 }
 0x1cd   :  { %v354_v50 = vadd.f32 %v353_v48, %v352_v47 }
 0x1cf   :  { %v288_v51 = vadd.f32 %v354_v50, %v319_v49 }
 0x1d1   :  { %v292_v52 = vsel %vm291_vm0, %v288_v51, -inf }
 0x1d2   :  { %293 = vmax.xlane.f32.xlu0 %v292_v52 }
 0x25b   :  { %v294_v53 = vpop.xlane.xlu0 %293 }
 0x25c   :  { %v295_v54 = vsub.f32 %v288_v51, %v294_v53 }
 0x25e   :  { %v296_v55 = vmul.f32 1.442695, %v295_v54 }
 0x260   :  { %356 = vpow2.f32 %v296_v55 }
 0x26d   :  { %v357_v56 = vpop.eup %356 }
 0x26e   :  { %v298_v57 = vsel %vm291_vm0, %v357_v56, 0.0 }
 0x26f   :  { %299 = vadd.xlane.f32.xlu0 %v298_v57 }
 0x2f8   :  { %v300_v58 = vpop.xlane.xlu0 %299 }
 0x2f9   :  { %358 = vrcp.f32 %v300_v58 }
 0x306   :  { %v359_v59 = vpop.eup %358 }
 0x307   :  { %v302_v60 = vmul.f32 %v359_v59, %v357_v56 }
 0x309   :  { %303 = vst [vmem:[#allocation2] sm:$0x3] %v302_v60 }
 0x30a   :  { %371 = shalt.err (!%p368_p4)
}
 0x30b   :  { %313 = dma.vmem_to_hbm [thread:$0]  %s311_s8, 32, %s723_s5, [#allocation3]  }
 0x30c   :  { %380 = dma.done.wait [#allocation3], 32  }
 0x30d   :  { %381 = vsyncadd [#allocation3], 4294967264 }
 0x30e   :  { %317 = vsyncpa [#allocation3], 1 }

</bundles_post_ra>
